<compile_context>
chip_gen: v7x
topology: tpu7x:2x2x1
jax: 0.10.0
libtpu: 0.0.40
codegen_flags: <defaults>
</compile_context>

<pallas_src>
import jax
import jax.numpy as jnp
from jax import lax
from jax.experimental import pallas as pl
from jax.experimental.pallas import tpu as pltpu


def _sigmoid(x):
    # sigmoid(x) = 0.5 * (1 + tanh(x/2)): one EUP transcendental + FMA, no divide.
    return 0.5 * jnp.tanh(0.5 * x) + 0.5


def _log_sigmoid(x):
    # Numerically stable log(sigmoid(x)) = min(x, 0) - log1p(exp(-|x|)).
    return jnp.minimum(x, 0.0) - jnp.log1p(jnp.exp(-jnp.abs(x)))


def mlp_kernel(x_ref,
               w1_ref, b1_ref,
               w2_ref, b2_ref,
               w3_ref, b3_ref,
               w4_ref, b4_ref,
               out_ref):
    # x_ref: (TILE_B, input_dim).  Layer 1 contracts the feature axis of both
    # operands so the result is (h1, TILE_B): batch lives on the lane axis for
    # every activation, and no HBM-side transpose of x is needed.
    h1 = lax.dot_general(
        w1_ref[...], x_ref[...],
        dimension_numbers=(((1,), (1,)), ((), ())),
        preferred_element_type=jnp.float32) + b1_ref[...]
    a1 = _sigmoid(h1).astype(w2_ref.dtype)          # elementwise in f32, cast for MXU

    h2 = jnp.dot(w2_ref[...], a1,
                 preferred_element_type=jnp.float32) + b2_ref[...]
    a2 = _sigmoid(h2).astype(w3_ref.dtype)

    h3 = jnp.dot(w3_ref[...], a2,
                 preferred_element_type=jnp.float32) + b3_ref[...]
    a3 = _log_sigmoid(h3)                           # f32, (h3_dim, TILE_B)

    # Final layer has a single output feature: VPU multiply + sublane reduce
    # instead of an MXU matmul lighting up one result row.
    h4 = jnp.sum(a3 * w4_ref[...], axis=0, keepdims=True) + b4_ref[...]
    out_ref[...] = _sigmoid(h4).astype(out_ref.dtype)


def _round_up(n, m):
    return ((n + m - 1) // m) * m


def mlp_forward(x, params, *, tile_b=None, compute_dtype=jnp.bfloat16,
                input_buffering=None):
    """Forward pass of the MLP.

    params: PyTorch-layout weights: w* is [out_features, in_features],
            b* is [out_features].
    tile_b: batch tile; if None it is derived from the chip's VMEM capacity.
    input_buffering: optional pipeline depth for the streamed x BlockSpec
            (e.g. 3 on v5e/v6e if the x DMA shows up exposed in xprof).
    """
    B, input_dim = x.shape
    h1 = params["w1"].shape[0]
    h2 = params["w2"].shape[0]
    h3 = params["w3"].shape[0]

    lane = 128
    itemsize = jnp.dtype(compute_dtype).itemsize

    # ---- Per-generation batch-tile selection ------------------------------
    try:
        info = pltpu.get_tpu_info()
        vmem_cap = getattr(info, "vmem_capacity_bytes", None) or 64 * 1024 * 1024
    except Exception:  # pragma: no cover - conservative fallback
        vmem_cap = 64 * 1024 * 1024  # v7x-sized assumption (smallest current gen)

    if tile_b is None:
        # VMEM per batch row (double-buffered lane-padded x tile, f32
        # activation intermediates with 2x slack, double-buffered output row).
        per_row = (2 * _round_up(input_dim, lane) * itemsize
                   + (_round_up(h1, 8) + _round_up(h2, 8) + _round_up(h3, 8)) * 4 * 2
                   + 2 * 4)
        budget = vmem_cap // 3                      # leave headroom for weights/scratch
        cap = max(lane, (budget // per_row) // lane * lane)
        cap = min(cap, 65536)
        # Keep >=2 grid steps whenever the batch allows it (v7x megacore).
        half_b = _round_up(pl.cdiv(B, 2), lane)
        tile_b = max(lane, min(cap, half_b))
    else:
        tile_b = max(lane, (tile_b // lane) * lane)

    b_pad = _round_up(B, tile_b)
    grid = (b_pad // tile_b,)

    # Pad only the batch remainder (skipped entirely when B divides tile_b);
    # padded rows produce finite values and are sliced off below.
    if b_pad != B:
        x = jnp.pad(x, ((0, b_pad - B), (0, 0)))
    x = x.astype(compute_dtype)                                 # (b_pad, input_dim)

    w1 = params["w1"].astype(compute_dtype)                     # (h1, input_dim)
    w2 = params["w2"].astype(compute_dtype)                     # (h2, h1)
    w3 = params["w3"].astype(compute_dtype)                     # (h3, h2)
    w4 = params["w4"].reshape(h3, 1).astype(jnp.float32)        # column for VPU layer
    b1 = params["b1"].reshape(h1, 1).astype(jnp.float32)
    b2 = params["b2"].reshape(h2, 1).astype(jnp.float32)
    b3 = params["b3"].reshape(h3, 1).astype(jnp.float32)
    b4 = params["b4"].reshape(1, 1).astype(jnp.float32)

    resident = lambda shape: pl.BlockSpec(shape, lambda i: (0, 0))

    x_spec_kwargs = {}
    if input_buffering is not None and input_buffering != 2:
        x_spec_kwargs["pipeline_mode"] = pl.Buffered(input_buffering)
    x_spec = pl.BlockSpec((tile_b, input_dim), lambda i: (i, 0), **x_spec_kwargs)

    vmem_limit = int(min(vmem_cap * 3 // 4, 100 * 1024 * 1024))

    out = pl.pallas_call(
        mlp_kernel,
        grid=grid,
        in_specs=[
            x_spec,                                   # streamed input, single HBM read
            resident(w1.shape), resident(b1.shape),   # VMEM-resident weights/biases
            resident(w2.shape), resident(b2.shape),
            resident(w3.shape), resident(b3.shape),
            resident(w4.shape), resident(b4.shape),
        ],
        out_specs=pl.BlockSpec((1, tile_b), lambda i: (0, i)),   # lane-dense writeback
        out_shape=jax.ShapeDtypeStruct((1, b_pad), jnp.float32),
        compiler_params=pltpu.CompilerParams(
            dimension_semantics=("parallel",),        # megacore sharding of batch tiles
            vmem_limit_bytes=vmem_limit,
        ),
    )(x, w1, b1, w2, b2, w3, b3, w4, b4)

    return out[0, :B].reshape(B, 1)


def init_params(key, input_dim, h1, h2, h3):
    """Deterministic synthetic parameters, PyTorch nn.Linear layout/init."""
    ks = jax.random.split(key, 8)

    def linear(kw, kb, fan_in, fan_out):
        bound = 1.0 / jnp.sqrt(fan_in)
        w = jax.random.uniform(kw, (fan_out, fan_in), jnp.float32, -bound, bound)
        b = jax.random.uniform(kb, (fan_out,), jnp.float32, -bound, bound)
        return w, b

    w1, b1 = linear(ks[0], ks[1], input_dim, h1)
    w2, b2 = linear(ks[2], ks[3], h1, h2)
    w3, b3 = linear(ks[4], ks[5], h2, h3)
    w4, b4 = linear(ks[6], ks[7], h3, 1)
    return dict(w1=w1, b1=b1, w2=w2, b2=b2, w3=w3, b3=b3, w4=w4, b4=b4)


def reference_forward(x, p):
    a1 = jax.nn.sigmoid(x @ p["w1"].T + p["b1"])
    a2 = jax.nn.sigmoid(a1 @ p["w2"].T + p["b2"])
    a3 = jax.nn.log_sigmoid(a2 @ p["w3"].T + p["b3"])
    return jax.nn.sigmoid(a3 @ p["w4"].T + p["b4"])


if __name__ == "__main__":
    key = jax.random.PRNGKey(0)
    k_x, k_p = jax.random.split(key)

    batch, input_dim, h1, h2, h3 = 8, 16, 32, 32, 16
    x = jax.random.normal(k_x, (batch, input_dim), jnp.float32)
    params = init_params(k_p, input_dim, h1, h2, h3)

    ref = reference_forward(x, params).reshape(batch, 1)

    # f32 path: exact-tolerance check against the reference.
    out_f32 = jax.block_until_ready(mlp_forward(x, params, compute_dtype=jnp.float32))
    assert out_f32.shape == (batch, 1)
    assert jnp.allclose(out_f32, ref, atol=1e-5, rtol=1e-5), "f32 mismatch vs reference"

    # bf16 streamed-operand path (perf default): looser tolerance is expected
    # precision loss from bf16 MXU operands, not a kernel bug.
    out_bf16 = jax.block_until_ready(mlp_forward(x, params))
    assert out_bf16.shape == (batch, 1)
    assert jnp.allclose(out_bf16, ref, atol=2e-2, rtol=2e-2), "bf16 mismatch vs reference"

    print("KERNEL_OK")
</pallas_src>

<mosaic_0001>
module attributes {stable_mosaic.version = 11 : i64} {
  func.func @mlp_kernel(%arg0: i32, %arg1: memref<128x16xf32, #tpu.memory_space<vmem>>, %arg2: memref<32x16xf32, #tpu.memory_space<vmem>>, %arg3: memref<32x1xf32, #tpu.memory_space<vmem>>, %arg4: memref<32x32xf32, #tpu.memory_space<vmem>>, %arg5: memref<32x1xf32, #tpu.memory_space<vmem>>, %arg6: memref<16x32xf32, #tpu.memory_space<vmem>>, %arg7: memref<16x1xf32, #tpu.memory_space<vmem>>, %arg8: memref<16x1xf32, #tpu.memory_space<vmem>>, %arg9: memref<1x1xf32, #tpu.memory_space<vmem>>, %arg10: memref<1x128xf32, #tpu.memory_space<vmem>>) attributes {dimension_semantics = [#tpu.dimension_semantics<parallel>], iteration_bounds = array<i64: 1>, scalar_prefetch = 0 : i64, scratch_operands = 0 : i64, tpu.core_type = #tpu.core_type<tc>, window_params = [{transform_indices = @transform_0, window_bounds = array<i64: 128, 16>}, {pipeline_mode = #tpu.pipeline_mode<synchronous>, transform_indices = @transform_1, window_bounds = array<i64: 32, 16>}, {pipeline_mode = #tpu.pipeline_mode<synchronous>, transform_indices = @transform_2, window_bounds = array<i64: 32, 1>}, {pipeline_mode = #tpu.pipeline_mode<synchronous>, transform_indices = @transform_3, window_bounds = array<i64: 32, 32>}, {pipeline_mode = #tpu.pipeline_mode<synchronous>, transform_indices = @transform_4, window_bounds = array<i64: 32, 1>}, {pipeline_mode = #tpu.pipeline_mode<synchronous>, transform_indices = @transform_5, window_bounds = array<i64: 16, 32>}, {pipeline_mode = #tpu.pipeline_mode<synchronous>, transform_indices = @transform_6, window_bounds = array<i64: 16, 1>}, {pipeline_mode = #tpu.pipeline_mode<synchronous>, transform_indices = @transform_7, window_bounds = array<i64: 16, 1>}, {pipeline_mode = #tpu.pipeline_mode<synchronous>, transform_indices = @transform_8, window_bounds = array<i64: 1, 1>}, {transform_indices = @transform_9, window_bounds = array<i64: 1, 128>}]} {
    %c0 = arith.constant 0 : index
    %c0_0 = arith.constant 0 : index
    %0 = vector.load %arg2[%c0, %c0_0] : memref<32x16xf32, #tpu.memory_space<vmem>>, vector<32x16xf32>
    %c0_1 = arith.constant 0 : index
    %c0_2 = arith.constant 0 : index
    %1 = vector.load %arg1[%c0_1, %c0_2] : memref<128x16xf32, #tpu.memory_space<vmem>>, vector<128x16xf32>
    %cst = arith.constant dense<0.000000e+00> : vector<32x128xf32>
    %2 = tpu.matmul %0, %1, %cst {dimension_numbers = #tpu.dot_dimension_numbers<[1], [1], [0], [0], [0, 0, 1, 0], [], []>} : vector<32x16xf32>, vector<128x16xf32>, vector<32x128xf32> -> vector<32x128xf32>
    %c0_3 = arith.constant 0 : index
    %c0_4 = arith.constant 0 : index
    %3 = vector.load %arg3[%c0_3, %c0_4] : memref<32x1xf32, #tpu.memory_space<vmem>>, vector<32x1xf32>
    %4 = vector.broadcast %3 : vector<32x1xf32> to vector<32x128xf32>
    %5 = arith.addf %2, %4 : vector<32x128xf32>
    %cst_5 = arith.constant 5.000000e-01 : f32
    %6 = vector.broadcast %cst_5 : f32 to vector<32x128xf32>
    %7 = arith.mulf %6, %5 : vector<32x128xf32>
    %8 = math.tanh %7 : vector<32x128xf32>
    %cst_6 = arith.constant 5.000000e-01 : f32
    %9 = vector.broadcast %cst_6 : f32 to vector<32x128xf32>
    %10 = arith.mulf %9, %8 : vector<32x128xf32>
    %cst_7 = arith.constant 5.000000e-01 : f32
    %11 = vector.broadcast %cst_7 : f32 to vector<32x128xf32>
    %12 = arith.addf %10, %11 : vector<32x128xf32>
    %c0_8 = arith.constant 0 : index
    %c0_9 = arith.constant 0 : index
    %13 = vector.load %arg4[%c0_8, %c0_9] : memref<32x32xf32, #tpu.memory_space<vmem>>, vector<32x32xf32>
    %cst_10 = arith.constant dense<0.000000e+00> : vector<32x128xf32>
    %14 = tpu.matmul %13, %12, %cst_10 {dimension_numbers = #tpu.dot_dimension_numbers<[1], [0], [0], [1], [0, 0, 1, 1], [], []>} : vector<32x32xf32>, vector<32x128xf32>, vector<32x128xf32> -> vector<32x128xf32>
    %c0_11 = arith.constant 0 : index
    %c0_12 = arith.constant 0 : index
    %15 = vector.load %arg5[%c0_11, %c0_12] : memref<32x1xf32, #tpu.memory_space<vmem>>, vector<32x1xf32>
    %16 = vector.broadcast %15 : vector<32x1xf32> to vector<32x128xf32>
    %17 = arith.addf %14, %16 : vector<32x128xf32>
    %cst_13 = arith.constant 5.000000e-01 : f32
    %18 = vector.broadcast %cst_13 : f32 to vector<32x128xf32>
    %19 = arith.mulf %18, %17 : vector<32x128xf32>
    %20 = math.tanh %19 : vector<32x128xf32>
    %cst_14 = arith.constant 5.000000e-01 : f32
    %21 = vector.broadcast %cst_14 : f32 to vector<32x128xf32>
    %22 = arith.mulf %21, %20 : vector<32x128xf32>
    %cst_15 = arith.constant 5.000000e-01 : f32
    %23 = vector.broadcast %cst_15 : f32 to vector<32x128xf32>
    %24 = arith.addf %22, %23 : vector<32x128xf32>
    %c0_16 = arith.constant 0 : index
    %c0_17 = arith.constant 0 : index
    %25 = vector.load %arg6[%c0_16, %c0_17] : memref<16x32xf32, #tpu.memory_space<vmem>>, vector<16x32xf32>
    %cst_18 = arith.constant dense<0.000000e+00> : vector<16x128xf32>
    %26 = tpu.matmul %25, %24, %cst_18 {dimension_numbers = #tpu.dot_dimension_numbers<[1], [0], [0], [1], [0, 0, 1, 1], [], []>} : vector<16x32xf32>, vector<32x128xf32>, vector<16x128xf32> -> vector<16x128xf32>
    %c0_19 = arith.constant 0 : index
    %c0_20 = arith.constant 0 : index
    %27 = vector.load %arg7[%c0_19, %c0_20] : memref<16x1xf32, #tpu.memory_space<vmem>>, vector<16x1xf32>
    %28 = vector.broadcast %27 : vector<16x1xf32> to vector<16x128xf32>
    %29 = arith.addf %26, %28 : vector<16x128xf32>
    %cst_21 = arith.constant 0.000000e+00 : f32
    %30 = vector.broadcast %cst_21 : f32 to vector<16x128xf32>
    %31 = arith.minimumf %29, %30 : vector<16x128xf32>
    %32 = math.absf %29 : vector<16x128xf32>
    %cst_22 = arith.constant 0.000000e+00 : f32
    %33 = vector.broadcast %cst_22 : f32 to vector<16x128xf32>
    %34 = arith.subf %33, %32 : vector<16x128xf32>
    %35 = math.exp %34 : vector<16x128xf32>
    %36 = math.log1p %35 : vector<16x128xf32>
    %37 = arith.subf %31, %36 : vector<16x128xf32>
    %c0_23 = arith.constant 0 : index
    %c0_24 = arith.constant 0 : index
    %38 = vector.load %arg8[%c0_23, %c0_24] : memref<16x1xf32, #tpu.memory_space<vmem>>, vector<16x1xf32>
    %39 = vector.broadcast %38 : vector<16x1xf32> to vector<16x128xf32>
    %40 = arith.mulf %37, %39 : vector<16x128xf32>
    %cst_25 = arith.constant dense<0.000000e+00> : vector<128xf32>
    %41 = vector.multi_reduction <add>, %40, %cst_25 [0] : vector<16x128xf32> to vector<128xf32>
    %42 = vector.shape_cast %41 : vector<128xf32> to vector<1x128xf32>
    %c0_26 = arith.constant 0 : index
    %c0_27 = arith.constant 0 : index
    %43 = vector.load %arg9[%c0_26, %c0_27] : memref<1x1xf32, #tpu.memory_space<vmem>>, vector<1x1xf32>
    %44 = vector.broadcast %43 : vector<1x1xf32> to vector<1x128xf32>
    %45 = arith.addf %42, %44 : vector<1x128xf32>
    %cst_28 = arith.constant 5.000000e-01 : f32
    %46 = vector.broadcast %cst_28 : f32 to vector<1x128xf32>
    %47 = arith.mulf %46, %45 : vector<1x128xf32>
    %48 = math.tanh %47 : vector<1x128xf32>
    %cst_29 = arith.constant 5.000000e-01 : f32
    %49 = vector.broadcast %cst_29 : f32 to vector<1x128xf32>
    %50 = arith.mulf %49, %48 : vector<1x128xf32>
    %cst_30 = arith.constant 5.000000e-01 : f32
    %51 = vector.broadcast %cst_30 : f32 to vector<1x128xf32>
    %52 = arith.addf %50, %51 : vector<1x128xf32>
    %c0_31 = arith.constant 0 : index
    %c0_32 = arith.constant 0 : index
    %53 = vector.load %arg10[%c0_31, %c0_32] : memref<1x128xf32, #tpu.memory_space<vmem>>, vector<1x128xf32>
    tpu.vector_store %arg10[%c0_31, %c0_32], %52 {strides = array<i32>} : memref<1x128xf32, #tpu.memory_space<vmem>>, vector<1x128xf32>,
    return
  }
  func.func @transform_0(%arg0: i32) -> (i32, i32) {
    %c0_i32 = arith.constant 0 : i32
    %c0_i32_0 = arith.constant 0 : i32
    return %arg0, %c0_i32 : i32, i32
  }
  func.func @transform_1(%arg0: i32) -> (i32, i32) {
    %c0_i32 = arith.constant 0 : i32
    %c0_i32_0 = arith.constant 0 : i32
    %c0_i32_1 = arith.constant 0 : i32
    return %c0_i32, %c0_i32_0 : i32, i32
  }
  func.func @transform_2(%arg0: i32) -> (i32, i32) {
    %c0_i32 = arith.constant 0 : i32
    %c0_i32_0 = arith.constant 0 : i32
    %c0_i32_1 = arith.constant 0 : i32
    return %c0_i32, %c0_i32_0 : i32, i32
  }
  func.func @transform_3(%arg0: i32) -> (i32, i32) {
    %c0_i32 = arith.constant 0 : i32
    %c0_i32_0 = arith.constant 0 : i32
    %c0_i32_1 = arith.constant 0 : i32
    return %c0_i32, %c0_i32_0 : i32, i32
  }
  func.func @transform_4(%arg0: i32) -> (i32, i32) {
    %c0_i32 = arith.constant 0 : i32
    %c0_i32_0 = arith.constant 0 : i32
    %c0_i32_1 = arith.constant 0 : i32
    return %c0_i32, %c0_i32_0 : i32, i32
  }
  func.func @transform_5(%arg0: i32) -> (i32, i32) {
    %c0_i32 = arith.constant 0 : i32
    %c0_i32_0 = arith.constant 0 : i32
    %c0_i32_1 = arith.constant 0 : i32
    return %c0_i32, %c0_i32_0 : i32, i32
  }
  func.func @transform_6(%arg0: i32) -> (i32, i32) {
    %c0_i32 = arith.constant 0 : i32
    %c0_i32_0 = arith.constant 0 : i32
    %c0_i32_1 = arith.constant 0 : i32
    return %c0_i32, %c0_i32_0 : i32, i32
  }
  func.func @transform_7(%arg0: i32) -> (i32, i32) {
    %c0_i32 = arith.constant 0 : i32
    %c0_i32_0 = arith.constant 0 : i32
    %c0_i32_1 = arith.constant 0 : i32
    return %c0_i32, %c0_i32_0 : i32, i32
  }
  func.func @transform_8(%arg0: i32) -> (i32, i32) {
    %c0_i32 = arith.constant 0 : i32
    %c0_i32_0 = arith.constant 0 : i32
    %c0_i32_1 = arith.constant 0 : i32
    return %c0_i32, %c0_i32_0 : i32, i32
  }
  func.func @transform_9(%arg0: i32) -> (i32, i32) {
    %c0_i32 = arith.constant 0 : i32
    %c0_i32_0 = arith.constant 0 : i32
    return %c0_i32, %arg0 : i32, i32
  }
}

</mosaic_0001>

<bundles_post_ra>
// kernel: tpu_custom_call.1
= control target key start
LH: loop header
LB: loop body
LE: loop exit
PB: predicated region body
PF: predicated region fallthrough
CT: control target
= control target key end

     0   :  { %s1029_s0 = inlined_call_operand.vmem [shape: f32[128,16], index: 0, kind: input, shape index: {}]   ;;  %s1030_s1 = inlined_call_operand.vmem [shape: f32[32,16], index: 1, kind: input, shape index: {}]   ;;  %s1031_s2 = inlined_call_operand.vmem [shape: f32[32,1], index: 2, kind: input, shape index: {}]   ;;  %s1032_s3 = inlined_call_operand.vmem [shape: f32[32,32], index: 3, kind: input, shape index: {}]   ;;  %s1033_s4 = inlined_call_operand.vmem [shape: f32[32,1], index: 4, kind: input, shape index: {}]   ;;  %s1034_s5 = inlined_call_operand.vmem [shape: f32[16,32], index: 5, kind: input, shape index: {}]   ;;  %s1035_s6 = inlined_call_operand.vmem [shape: f32[16,1], index: 6, kind: input, shape index: {}]   ;;  %s1036_s7 = inlined_call_operand.vmem [shape: f32[16,1], index: 7, kind: input, shape index: {}]   ;;  %s1037_s8 = inlined_call_operand.<no memory space> [shape: f32[1,1], index: 8, kind: input, shape index: {}]   ;;  %s1038_s9 = inlined_call_operand.hbm [shape: f32[1,128], index: 9, kind: output, shape index: {}]  }
   0x1   :  { %v14_v0 = vstv %s1037_s8 }
   0x2   :  { %15 = vst [vmem:[#allocation2] sm:$0x1] %v14_v0 }
   0x3   :  { %v39_v1 = vld [vmem:[%s1029_s0] sm:$0xff]  ;;  %v40_v2 = vld [vmem:[%s1029_s0 + $0x8] sm:$0xff]  ;;  %vm79_vm0 = vcmask 130048   ;;  %v41_v3 = vld [vmem:[%s1029_s0 + $0x10] sm:$0xff]  ;;  %v800_v7 = vmov 0  }
   0x4   :  { %v682_v4 = vpack.c.bf16 %v40_v2, %v39_v1  ;;  %vm866_vm1 = vmpackc.low %vm79_vm0, %vm79_vm0  ;;  %v42_v6 = vld [vmem:[%s1029_s0 + $0x18] sm:$0xff]  ;;  %748 = vset.pattern.permute.xlu0 %v800_v7  ;;  %749 = vset.pattern.permute.xlu1 %v800_v7  ;;  %v35_v9 = vld [vmem:[%s1030_s1] sm:$0xff] }
   0x5   :  { %v688_v8 = vpack.c.bf16 %v42_v6, %v41_v3  ;;  %v43_v10 = vld [vmem:[%s1029_s0 + $0x20] sm:$0xff]  ;;  %v44_v11 = vld [vmem:[%s1029_s0 + $0x28] sm:$0xff]  ;;  %651 = vmatprep.mubr.msk.f32.mxu0 %vm79_vm0, %v35_v9  ;;  %v57_v13 = vld [vmem:[%s1031_s2 + $0x10] sm:$0xff] }
   0x6   :  { %684 = vmatprep.subr.msk.bf16.mxu0 %vm866_vm1, %v682_v4  ;;  %v55_v12 = vld [vmem:[%s1031_s2] sm:$0xff]  ;;  %71 = vperm.xlu1 %749, %v57_v13   ;;  %v694_v14 = vpack.c.bf16 %v44_v11, %v43_v10  ;;  %v56_v15 = vld [vmem:[%s1031_s2 + $0x8] sm:$0xff]  ;;  %v58_v16 = vld [vmem:[%s1031_s2 + $0x18] sm:$0xff] }
   0x7   :  { %687 = vmatpush3.bf16.xpose.msk.msra.mxu0 %vm866_vm1, %v682_v4  ;;  %61 = vperm.xlu0 %748, %v55_v12  }
   0x8   :  { %690 = vmatprep.subr.msk.bf16.mxu0 %vm866_vm1, %v688_v8 }
   0x9   :  { %16 = vsyncpa [#allocation4], 0  ;;  %v245_v17 = vld [vmem:[%s1033_s4] sm:$0xff]  ;;  %v45_v18 = vld [vmem:[%s1029_s0 + $0x30] sm:$0xff]  ;;  %vm269_vm2 = vcmask 261120  }
   0xa   :  { %76 = vperm.xlu1 %749, %v58_v16   ;;  %v46_v19 = vld [vmem:[%s1029_s0 + $0x38] sm:$0xff]  ;;  %v246_v20 = vld [vmem:[%s1033_s4 + $0x8] sm:$0xff]  ;;  %v247_v22 = vld [vmem:[%s1033_s4 + $0x10] sm:$0xff] }
   0xb   :  { %66 = vperm.xlu0 %748, %v56_v15   ;;  %v700_v21 = vpack.c.bf16 %v46_v19, %v45_v18  ;;  %v248_v23 = vld [vmem:[%s1033_s4 + $0x18] sm:$0xff]  ;;  %v385_v24 = vld [vmem:[%s1035_s6] sm:$0xff]  ;;  %v48_v26 = vld [vmem:[%s1029_s0 + $0x48] sm:$0xff] }
   0xc   :  { %v47_v25 = vld [vmem:[%s1029_s0 + $0x40] sm:$0xff]  ;;  %v386_v27 = vld [vmem:[%s1035_s6 + $0x8] sm:$0xff]  ;;  %v49_v32 = vld [vmem:[%s1029_s0 + $0x50] sm:$0xff] }
   0xd   :  { %v706_v28 = vpack.c.bf16 %v48_v26, %v47_v25  ;;  %v508_v29 = vld [vmem:[%s1036_s7] sm:$0xff]  ;;  %v509_v30 = vld [vmem:[%s1036_s7 + $0x8] sm:$0xff]  ;;  %v50_v33 = vld [vmem:[%s1029_s0 + $0x58] sm:$0xff] }
   0xe   :  { %256 = vperm.xlu1 %749, %v246_v20   ;;  %v529_v31 = vld [vmem:[#allocation2] sm:$0x1]  ;;  %v712_v34 = vpack.c.bf16 %v50_v33, %v49_v32  ;;  %v52_v36 = vld [vmem:[%s1029_s0 + $0x68] sm:$0xff]  ;;  %v53_v38 = vld [vmem:[%s1029_s0 + $0x70] sm:$0xff] }
   0xf   :  { %693 = vmatpush3.bf16.xpose.msk.msra.mxu0 %vm866_vm1, %v688_v8  ;;  %251 = vperm.xlu0 %748, %v245_v17   ;;  %v51_v35 = vld [vmem:[%s1029_s0 + $0x60] sm:$0xff]  ;;  %v54_v39 = vld [vmem:[%s1029_s0 + $0x78] sm:$0xff]  ;;  %v36_v41 = vld [vmem:[%s1030_s1 + $0x8] sm:$0xff] }
  0x10   :  { %696 = vmatprep.subr.msk.bf16.mxu0 %vm866_vm1, %v694_v14  ;;  %v718_v37 = vpack.c.bf16 %v52_v36, %v51_v35  ;;  %v724_v40 = vpack.c.bf16 %v54_v39, %v53_v38  ;;  %v37_v42 = vld [vmem:[%s1030_s1 + $0x10] sm:$0xff]  ;;  %v38_v43 = vld [vmem:[%s1030_s1 + $0x18] sm:$0xff]  ;;  %v241_v44 = vld [vmem:[%s1032_s3] sm:$0xff] }
  0x11   :  { %665 = vmatprep.mubr.msk.f32.mxu1 %vm269_vm2, %v241_v44  ;;  %v242_v11 = vld [vmem:[%s1032_s3 + $0x8] sm:$0xff]  ;;  %v243_v12 = vld [vmem:[%s1032_s3 + $0x10] sm:$0xff]  ;;  %v244_v13 = vld [vmem:[%s1032_s3 + $0x18] sm:$0xff] }
  0x12   :  { %266 = vperm.xlu1 %749, %v248_v23  }
  0x13   :  { %261 = vperm.xlu0 %748, %v247_v22  }
  0x16   :  { %394 = vperm.xlu1 %749, %v386_v27  }
  0x17   :  { %699 = vmatpush3.bf16.xpose.msk.msra.mxu0 %vm866_vm1, %v694_v14  ;;  %389 = vperm.xlu0 %748, %v385_v24   ;;  %v383_v14 = vld [vmem:[%s1034_s5] sm:$0xff] }
  0x18   :  { %702 = vmatprep.subr.msk.bf16.mxu0 %vm866_vm1, %v700_v21 }
  0x1a   :  { %517 = vperm.xlu1 %749, %v509_v30  }
  0x1b   :  { %512 = vperm.xlu0 %748, %v508_v29  }
  0x1f   :  { %705 = vmatpush3.bf16.xpose.msk.msra.mxu0 %vm866_vm1, %v700_v21  ;;  %532 = vperm.xlu0 %748, %v529_v31  }
  0x20   :  { %708 = vmatprep.subr.msk.bf16.mxu0 %vm866_vm1, %v706_v28 }
  0x27   :  { %711 = vmatpush3.bf16.xpose.msk.msra.mxu0 %vm866_vm1, %v706_v28 }
  0x28   :  { %714 = vmatprep.subr.msk.bf16.mxu0 %vm866_vm1, %v712_v34 }
  0x2f   :  { %717 = vmatpush3.bf16.xpose.msk.msra.mxu0 %vm866_vm1, %v712_v34 }
  0x30   :  { %720 = vmatprep.subr.msk.bf16.mxu0 %vm866_vm1, %v718_v37 }
  0x37   :  { %723 = vmatpush3.bf16.xpose.msk.msra.mxu0 %vm866_vm1, %v718_v37 }
  0x38   :  { %726 = vmatprep.subr.msk.bf16.mxu0 %vm866_vm1, %v724_v40 }
  0x3f   :  { %729 = vmatpush3.bf16.xpose.msk.msra.mxu0 %vm866_vm1, %v724_v40 }
  0x46   :  { %652 = vmatmul.mubr.msk.f32.vlgmr.msra.gmra.mrb[0].mxu0 %vm79_vm0, %v36_v41 }
  0x47   :  { %654 = vmatprep.mubr.msk.f32.mxu0 %vm79_vm0, %v37_v42 }
  0x4a   :  { %655 = vmatmul.mubr.msk.f32.gmra.mrb[2].mxu0 %vm79_vm0, %v38_v43 }
  0x85   :  { %v72_v46 = vpop.permute.xlu1 %71 }
  0x86   :  { %v62_v45 = vpop.permute.xlu0 %61 }
  0x89   :  { %v77_v53 = vpop.permute.xlu1 %76 }
  0x8a   :  { %v67_v47 = vpop.permute.xlu0 %66 }
  0x8d   :  { %v257_v15 = vpop.permute.xlu1 %256 }
  0x8e   :  { %v252_v16 = vpop.permute.xlu0 %251 }
  0x91   :  { %v267_v22 = vpop.permute.xlu1 %266 }
  0x92   :  { %v262_v25 = vpop.permute.xlu0 %261 }
 0x119   :  { %v653_v48 = vpop.f32.mrb[0].mxu0 }
 0x11a   :  { %v212_v49 = vadd.f32 %v653_v48, %v67_v47  ;;  %v206_v50 = vpop.f32.mrb[1].mxu0  ;;  %v390_v48 = vpop.permute.xlu0 %389 }
 0x11b   :  { %v207_v51 = vadd.f32 %v206_v50, %v62_v45  ;;  %v384_v45 = vld [vmem:[%s1034_s5 + $0x8] sm:$0xff]  ;;  %s801_s5 = smov [#allocation3]  }
 0x11c   :  { %v226_v52 = vmul.f32 0.5, %v212_v49  ;;  %s551_s11 = sshll.u32 %s801_s5, 4  ;;  %s552_s11 = int_to_ptr.vmem [resolvable:$true] %s551_s11 }
 0x11d   :  { %v225_v54 = vmul.f32 0.5, %v207_v51  ;;  %v656_v55 = vpop.f32.mrb[2].mxu0  ;;  %s776_s12 = scalar_lea.vmem %s552_s11, 16  ;;  %s780_s13 = scalar_lea.vmem %s552_s11, 32 }
 0x11e   :  { %750 = vtanh.f32 %v226_v52  ;;  %v222_v56 = vadd.f32 %v656_v55, %v77_v53  ;;  %v216_v57 = vpop.f32.mrb[3].mxu0  ;;  %p777_p0 = scmp.ne.s32.totalorder %s552_s11, %s776_s12  ;;  %p781_p1 = scmp.lt.s32.totalorder %s552_s11, %s552_s11 }
 0x11f   :  { %752 = vtanh.f32 %v225_v54  ;;  %v217_v58 = vadd.f32 %v216_v57, %v72_v46  ;;  %v395_v46 = vpop.permute.xlu1 %394  ;;  %p782_p2 = scmp.lt.s32.totalorder %s780_s13, %s776_s12 }
 0x120   :  { %v228_v59 = vmul.f32 0.5, %v222_v56 }
 0x121   :  { %v227_v60 = vmul.f32 0.5, %v217_v58  ;;  %p783_p3 = por %p782_p2, %p781_p1 }
 0x122   :  { %754 = vtanh.f32 %v228_v59 }
 0x123   :  { %756 = vtanh.f32 %v227_v60  ;;  %p784_p4 = pnand %p783_p3, %p777_p0 }
 0x128   :  { %v751_v61 = vpop.eup %750 }
 0x129   :  { %v753_v62 = vpop.eup %752  ;;  %v234_v63 = vmul.f32 0.5, %v751_v61 }
 0x12a   :  { %v233_v0 = vmul.f32 0.5, %v753_v62 }
 0x12b   :  { %v238_v1 = vadd.f32 0.5, %v234_v63 }
 0x12c   :  { %v755_v2 = vpop.eup %754  ;;  %v237_v3 = vadd.f32 0.5, %v233_v0 }
 0x12d   :  { %v757_v4 = vpop.eup %756  ;;  %v236_v5 = vmul.f32 0.5, %v755_v2 }
 0x12e   :  { %v235_v6 = vmul.f32 0.5, %v757_v4  ;;  %v730_v7 = vpack.c.bf16 %v238_v1, %v237_v3 }
 0x12f   :  { %v240_v8 = vadd.f32 0.5, %v236_v5 }
 0x130   :  { %v239_v9 = vadd.f32 0.5, %v235_v6  ;;  %731 = vmatprep.subr.bf16.mxu1 %v730_v7 }
 0x131   :  { %733 = vmatpush3.bf16.msra.mxu1 %v730_v7 }
 0x132   :  { %v734_v10 = vpack.c.bf16 %v240_v8, %v239_v9 }
 0x134   :  { %735 = vmatprep.subr.bf16.mxu1 %v734_v10 }
 0x135   :  { %737 = vmatpush3.bf16.msra.mxu1 %v734_v10 }
 0x138   :  { %666 = vmatmul.mubr.msk.f32.vlgmr.msra.gmra.mrb[0].mxu1 %vm269_vm2, %v242_v11 }
 0x139   :  { %668 = vmatprep.mubr.msk.f32.mxu1 %vm269_vm2, %v243_v12 }
 0x13c   :  { %669 = vmatmul.mubr.msk.f32.gmra.mrb[2].mxu1 %vm269_vm2, %v244_v13 }
 0x13d   :  { %679 = vmatprep.mubr.msk.f32.mxu1 %vm269_vm2, %v383_v14 }
 0x20b   :  { %v667_v17 = vpop.f32.mrb[0].mxu1 }
 0x20c   :  { %v354_v18 = vadd.f32 %v667_v17, %v257_v15  ;;  %v348_v19 = vpop.f32.mrb[1].mxu1  ;;  %v518_v15 = vpop.permute.xlu1 %517 }
 0x20d   :  { %v349_v20 = vadd.f32 %v348_v19, %v252_v16  ;;  %v513_v17 = vpop.permute.xlu0 %512 }
 0x20e   :  { %v368_v21 = vmul.f32 0.5, %v354_v18 }
 0x20f   :  { %v367_v23 = vmul.f32 0.5, %v349_v20  ;;  %v670_v24 = vpop.f32.mrb[2].mxu1  ;;  %v535_v20 = vlaneseq }
 0x210   :  { %758 = vtanh.f32 %v368_v21  ;;  %v364_v26 = vadd.f32 %v670_v24, %v267_v22  ;;  %v358_v27 = vpop.f32.mrb[3].mxu1 }
 0x211   :  { %760 = vtanh.f32 %v367_v23  ;;  %v359_v28 = vadd.f32 %v358_v27, %v262_v25  ;;  %v536_v23 = vshrl.u32 %v535_v20, 7 }
 0x212   :  { %v370_v29 = vmul.f32 0.5, %v364_v26 }
 0x213   :  { %v369_v30 = vmul.f32 0.5, %v359_v28  ;;  %v537_v26 = vsub.s32 0, %v536_v23  ;;  %v533_v28 = vpop.permute.xlu0 %532 }
 0x214   :  { %762 = vtanh.f32 %v370_v29 }
 0x215   :  { %764 = vtanh.f32 %v369_v30  ;;  %v538_v30 = vrot.slane %v533_v28, %v537_v26 }
 0x21a   :  { %v759_v31 = vpop.eup %758 }
 0x21b   :  { %v761_v32 = vpop.eup %760  ;;  %v376_v33 = vmul.f32 0.5, %v759_v31 }
 0x21c   :  { %v375_v34 = vmul.f32 0.5, %v761_v32 }
 0x21d   :  { %v380_v35 = vadd.f32 0.5, %v376_v33 }
 0x21e   :  { %v763_v36 = vpop.eup %762  ;;  %v379_v37 = vadd.f32 0.5, %v375_v34 }
 0x21f   :  { %v765_v38 = vpop.eup %764  ;;  %v378_v39 = vmul.f32 0.5, %v763_v36 }
 0x220   :  { %v377_v40 = vmul.f32 0.5, %v765_v38  ;;  %v738_v41 = vpack.c.bf16 %v380_v35, %v379_v37 }
 0x221   :  { %v382_v42 = vadd.f32 0.5, %v378_v39 }
 0x222   :  { %v381_v43 = vadd.f32 0.5, %v377_v40  ;;  %739 = vmatprep.subr.bf16.mxu1 %v738_v41 }
 0x223   :  { %741 = vmatpush3.bf16.msra.mxu1 %v738_v41 }
 0x224   :  { %v742_v44 = vpack.c.bf16 %v382_v42, %v381_v43 }
 0x226   :  { %743 = vmatprep.subr.bf16.mxu1 %v742_v44 }
 0x227   :  { %745 = vmatpush3.bf16.msra.mxu1 %v742_v44 }
 0x22a   :  { %680 = vmatmul.mubr.msk.f32.vlgmr.msra.gmra.mrb[4].mxu1 %vm269_vm2, %v384_v45 }
 0x2fd   :  { %v681_v47 = vpop.f32.mrb[4].mxu1 }
 0x2fe   :  { %v475_v49 = vadd.f32 %v681_v47, %v395_v46  ;;  %v469_v50 = vpop.f32.mrb[5].mxu1 }
 0x2ff   :  { %v470_v51 = vadd.f32 %v469_v50, %v390_v48 }
 0x300   :  { %v481_v52 = vand.u32 2147483647, %v475_v49  ;;  %v479_v8 = vmin.f32 %v475_v49, 0.0 }
 0x301   :  { %v480_v53 = vand.u32 2147483647, %v470_v51  ;;  %v478_v12 = vmin.f32 %v470_v51, 0.0 }
 0x302   :  { %v483_v54 = vsub.f32 0.0, %v481_v52 }
 0x303   :  { %v482_v55 = vsub.f32 0.0, %v480_v53 }
 0x304   :  { %v486_v56 = vmul.f32 1.442695, %v483_v54 }
 0x305   :  { %v484_v57 = vmul.f32 1.442695, %v482_v55 }
 0x306   :  { %766 = vpow2.f32 %v486_v56 }
 0x307   :  { %768 = vpow2.f32 %v484_v57 }
 0x310   :  { %v767_v58 = vpop.eup %766 }
 0x311   :  { %v769_v59 = vpop.eup %768  ;;  %v497_v60 = vadd.f32 1.0, %v767_v58  ;;  %v500_v62 = vmul.f32 -0.5, %v767_v58  ;;  %v503_v1 = vand.u32 2147483647, %v767_v58 }
 0x312   :  { %v488_v61 = vadd.f32 1.0, %v769_v59  ;;  %v491_v63 = vmul.f32 -0.5, %v769_v59  ;;  %v494_v3 = vand.u32 2147483647, %v769_v59 }
 0x313   :  { %770 = vlog2.f32 %v497_v60  ;;  %v501_v0 = vadd.f32 1.0, %v500_v62  ;;  %vm504_vm3 = vcmp.lt.f32.partialorder %v503_v1, 0.0004427343 }
 0x314   :  { %772 = vlog2.f32 %v488_v61  ;;  %v492_v2 = vadd.f32 1.0, %v491_v63  ;;  %vm495_vm4 = vcmp.lt.f32.partialorder %v494_v3, 0.0004427343 }
 0x315   :  { %v502_v7 = vmul.f32 %v767_v58, %v501_v0 }
 0x316   :  { %v493_v10 = vmul.f32 %v769_v59, %v492_v2 }
 0x31d   :  { %v771_v4 = vpop.eup %770 }
 0x31e   :  { %v773_v5 = vpop.eup %772  ;;  %v499_v6 = vmul.f32 0.6931472, %v771_v4 }
 0x31f   :  { %v490_v9 = vmul.f32 0.6931472, %v773_v5 }
 0x320   :  { %v505_v11 = vsel %vm504_vm3, %v502_v7, %v499_v6 }
 0x321   :  { %v507_v13 = vsub.f32 %v479_v8, %v505_v11  ;;  %v496_v14 = vsel %vm495_vm4, %v493_v10, %v490_v9 }
 0x322   :  { %v506_v16 = vsub.f32 %v478_v12, %v496_v14 }
 0x323   :  { %v521_v18 = vmul.f32 %v518_v15, %v507_v13 }
 0x324   :  { %v520_v19 = vmul.f32 %v513_v17, %v506_v16 }
 0x326   :  { %v522_v21 = vadd.f32 %v521_v18, %v520_v19 }
 0x328   :  { %v523_v22 = vrot.slane %v522_v21, 4 }
 0x32a   :  { %v524_v24 = vadd.f32 %v523_v22, %v522_v21 }
 0x32c   :  { %v525_v25 = vrot.slane %v524_v24, 2 }
 0x32e   :  { %v526_v27 = vadd.f32 %v525_v25, %v524_v24 }
 0x330   :  { %v527_v29 = vrot.slane %v526_v27, 1 }
 0x332   :  { %v528_v31 = vadd.f32 %v527_v29, %v526_v27 }
 0x334   :  { %v539_v32 = vadd.f32 %v538_v30, %v528_v31 }
 0x336   :  { %v540_v33 = vmul.f32 0.5, %v539_v32 }
 0x338   :  { %774 = vtanh.f32 %v540_v33 }
 0x342   :  { %v775_v34 = vpop.eup %774 }
 0x343   :  { %v542_v35 = vmul.f32 0.5, %v775_v34 }
 0x345   :  { %v543_v36 = vadd.f32 0.5, %v542_v35 }
 0x347   :  { %544 = vst [vmem:[#allocation3] sm:$0x1] %v543_v36 }
 0x348   :  { %787 = shalt.err (!%p784_p4)
}
 0x349   :  { %s788_s15 = scalar_lea.hbm %s1038_s9, 16 }
 0x34a   :  { %p789_p5 = scmp.ne.s32.totalorder %s1038_s9, %s788_s15  ;;  %p792_p6 = scmp.lt.u32.totalorder %s788_s15, %s1038_s9 }
 0x34c   :  { %p794_p7 = pnand %p792_p6, %p789_p5 }
 0x34e   :  { %797 = shalt.err (!%p794_p7)
}
 0x34f   :  { %554 = dma.vmem_to_hbm [thread:$0]  %s552_s11, 16, %s1038_s9, [#allocation4]  }
 0x350   :  { %798 = dma.done.wait [#allocation4], 16  }
 0x351   :  { %799 = vsyncadd [#allocation4], 4294967280 }
 0x352   :  { %558 = vsyncpa [#allocation4], 1 }

</bundles_post_ra>
